<compile_context>
chip_gen: v7x
topology: tpu7x:2x2x1
jax: 0.10.0
libtpu: 0.0.40
codegen_flags: <defaults>
</compile_context>

<pallas_src>
import functools

import jax
import jax.numpy as jnp
from jax.experimental import pallas as pl
from jax.experimental.pallas import tpu as pltpu


def _decoder_kernel(x_ref, dw_ref, db_ref, w_ref, b_ref, out_ref, h_scratch):
    """Grid = (3 heads, n vocab tiles).

    x_ref:  [B, E]        resident (index_map constant)
    dw_ref: [E, H]        resident
    db_ref: [1, H]        resident
    w_ref:  [1, H, TN]    streamed head-weight tile (bf16)
    b_ref:  [1, 1, TN]    streamed head-bias tile (f32)
    out_ref:[1, B, Vpad]  VMEM-resident per-head probability slab
    h_scratch: [B, H]     hidden activations, persists across grid steps
    """
    n = pl.program_id(1)
    tn = w_ref.shape[-1]

    # Hidden = tanh(dec_linear(x)); tiny matmul, recomputed once per head.
    @pl.when(n == 0)
    def _():
        h = jnp.tanh(
            jnp.dot(x_ref[...], dw_ref[...], preferred_element_type=jnp.float32)
            + db_ref[...]
        )
        h_scratch[...] = h.astype(h_scratch.dtype)
    # TODO(synk): nn.Dropout(p=0.5) is identity in eval mode; training-mode
    # stochastic masking is not reproduced here.

    # Logits tile for this (head, vocab-tile): stream the weight tile through
    # the MXU and write raw logits into the VMEM-resident output slab.
    logits = (
        jnp.dot(h_scratch[...], w_ref[0], preferred_element_type=jnp.float32)
        + b_ref[0]
    )                                                       # [B, TN] f32
    col = pl.multiple_of(n * tn, 128)
    out_ref[0, :, pl.ds(col, tn)] = logits

    # Finalize: full numerically-stable softmax on the resident slab (all in
    # VMEM, no extra HBM traffic; padded vocab columns carry bias=-1e30 -> 0).
    @pl.when(n == pl.num_programs(1) - 1)
    def _():
        s = out_ref[0]                                      # [B, Vpad]
        m = jnp.max(s, axis=-1, keepdims=True)
        e = jnp.exp(s - m)
        denom = jnp.sum(e, axis=-1, keepdims=True)
        out_ref[0] = e * pl.reciprocal(denom, approx=False)


def _round_up(x, m):
    return (x + m - 1) // m * m


@functools.partial(jax.jit, static_argnames=("tile_n", "weight_dtype"))
def decoder_forward(r, v, z, params, *, tile_n=2048, weight_dtype=jnp.bfloat16):
    """r, v: int32 [B]; z: float32 [B, E]. Returns (prob_sub, prob_obj, prob_target)."""
    word_emb = params["word_embeddings"]      # [V, E]  (frozen nn.Embedding)
    rel_emb = params["rel_embeddings"]        # [R, E]
    B, E = z.shape
    H = params["dec_w"].shape[1]
    V = params["sub_w"].shape[1]

    # --- glue: embedding lookups (tiny gathers) + layout prep -----------------
    h_r = jnp.take(rel_emb, r, axis=0)        # [B, E]
    h_v = jnp.take(word_emb, v, axis=0)       # [B, E]
    x = (h_r + h_v + z).astype(weight_dtype)  # [B, E]

    dec_w = params["dec_w"].astype(weight_dtype)   # [E, H]
    dec_b = params["dec_b"].astype(jnp.float32)    # [1, H]

    # Stack the three heads so one streamed matmul axis covers them all.
    w_heads = jnp.stack(
        [params["sub_w"], params["obj_w"], params["tgt_w"]], axis=0
    ).astype(weight_dtype)                          # [3, H, V]
    b_heads = jnp.stack(
        [params["sub_b"], params["obj_b"], params["tgt_b"]], axis=0
    ).astype(jnp.float32)                           # [3, 1, V]

    # Vocab tiling: lane-aligned tile, pad V so the grid covers it exactly.
    tn = min(int(tile_n), _round_up(V, 128))
    v_pad = _round_up(V, tn)
    if v_pad != V:
        w_heads = jnp.pad(w_heads, ((0, 0), (0, 0), (0, v_pad - V)))
        # Padded vocab columns get a huge negative bias -> softmax drives to 0.
        b_heads = jnp.pad(
            b_heads, ((0, 0), (0, 0), (0, v_pad - V)), constant_values=-1e30
        )
    n_tiles = v_pad // tn

    out = pl.pallas_call(
        _decoder_kernel,
        out_shape=jax.ShapeDtypeStruct((3, B, v_pad), jnp.float32),
        grid_spec=pltpu.PrefetchScalarGridSpec(
            num_scalar_prefetch=0,
            grid=(3, n_tiles),
            in_specs=[
                pl.BlockSpec((B, E), lambda h, n: (0, 0)),          # x (resident)
                pl.BlockSpec((E, H), lambda h, n: (0, 0)),          # dec_w (resident)
                pl.BlockSpec((1, H), lambda h, n: (0, 0)),          # dec_b (resident)
                pl.BlockSpec((1, H, tn), lambda h, n: (h, 0, n)),   # head weights (streamed)
                pl.BlockSpec((1, 1, tn), lambda h, n: (h, 0, n)),   # head biases (streamed)
            ],
            # Output block constant across the vocab axis -> stays resident in
            # VMEM as the per-head logits/probability accumulator.
            out_specs=pl.BlockSpec((1, B, v_pad), lambda h, n: (h, 0, 0)),
            scratch_shapes=[pltpu.VMEM((B, H), weight_dtype)],
        ),
        compiler_params=pltpu.CompilerParams(
            dimension_semantics=("parallel", "arbitrary"),
            vmem_limit_bytes=32 * 1024 * 1024,
        ),
    )(x, dec_w, dec_b, w_heads, b_heads)                     # [3, B, v_pad]

    return out[0, :, :V], out[1, :, :V], out[2, :, :V]


def make_params(key, vocab_size, num_relations, embedding_dim, hidden_dim):
    ks = jax.random.split(key, 10)
    scale = 0.05
    # Linear weights stored pre-transposed: [in, out]; biases as [1, out].
    return {
        "word_embeddings": scale * jax.random.normal(ks[0], (vocab_size, embedding_dim), jnp.float32),
        "rel_embeddings":  scale * jax.random.normal(ks[1], (num_relations, embedding_dim), jnp.float32),
        "dec_w": scale * jax.random.normal(ks[2], (embedding_dim, hidden_dim), jnp.float32),
        "dec_b": scale * jax.random.normal(ks[3], (1, hidden_dim), jnp.float32),
        "sub_w": scale * jax.random.normal(ks[4], (hidden_dim, vocab_size), jnp.float32),
        "sub_b": scale * jax.random.normal(ks[5], (1, vocab_size), jnp.float32),
        "obj_w": scale * jax.random.normal(ks[6], (hidden_dim, vocab_size), jnp.float32),
        "obj_b": scale * jax.random.normal(ks[7], (1, vocab_size), jnp.float32),
        "tgt_w": scale * jax.random.normal(ks[8], (hidden_dim, vocab_size), jnp.float32),
        "tgt_b": scale * jax.random.normal(ks[9], (1, vocab_size), jnp.float32),
    }


def _reference(r, v, z, p):
    x = jnp.take(p["rel_embeddings"], r, axis=0) + jnp.take(p["word_embeddings"], v, axis=0) + z
    h = jnp.tanh(x @ p["dec_w"] + p["dec_b"])

    def sm(w, b):
        return jax.nn.softmax(h @ w + b, axis=-1)

    return sm(p["sub_w"], p["sub_b"]), sm(p["obj_w"], p["obj_b"]), sm(p["tgt_w"], p["tgt_b"])


if __name__ == "__main__":
    # Small shapes consistent with the module.
    VOCAB, NUM_REL, EMB, HID, B = 128, 8, 32, 32, 8

    key = jax.random.PRNGKey(0)
    k_p, k_r, k_v, k_z = jax.random.split(key, 4)
    params = make_params(k_p, VOCAB, NUM_REL, EMB, HID)

    r = jax.random.randint(k_r, (B,), 0, NUM_REL, dtype=jnp.int32)
    v = jax.random.randint(k_v, (B,), 0, VOCAB, dtype=jnp.int32)
    z = jax.random.normal(k_z, (B, EMB), jnp.float32)

    refs = _reference(r, v, z, params)

    # (1) f32-weight path: exact parity with the reference forward pass.
    outs_f32 = decoder_forward(r, v, z, params, weight_dtype=jnp.float32)
    jax.block_until_ready(outs_f32)
    for o, ref in zip(outs_f32, refs):
        assert o.shape == (B, VOCAB)
        assert jnp.allclose(o, ref, atol=1e-5)
        assert jnp.allclose(jnp.sum(o, axis=-1), 1.0, atol=1e-4)

    # (2) default bf16-weight path (HBM-bandwidth-optimized).
    outs_bf16 = decoder_forward(r, v, z, params)
    jax.block_until_ready(outs_bf16)
    for o, ref in zip(outs_bf16, refs):
        assert jnp.allclose(o, ref, atol=2e-3)
        assert jnp.allclose(jnp.sum(o, axis=-1), 1.0, atol=1e-4)

    # (3) multi-tile + non-128-multiple vocab: exercises vocab streaming,
    #     padding, and the resident-slab softmax finalize across tiles.
    V2, R2, E2, H2 = 300, 5, 48, 64
    kp2, kr2, kv2, kz2 = jax.random.split(jax.random.PRNGKey(1), 4)
    p2 = make_params(kp2, V2, R2, E2, H2)
    r2 = jax.random.randint(kr2, (B,), 0, R2, dtype=jnp.int32)
    v2 = jax.random.randint(kv2, (B,), 0, V2, dtype=jnp.int32)
    z2 = jax.random.normal(kz2, (B, E2), jnp.float32)
    outs2 = decoder_forward(r2, v2, z2, p2, tile_n=128)
    jax.block_until_ready(outs2)
    refs2 = _reference(r2, v2, z2, p2)
    for o, ref in zip(outs2, refs2):
        assert o.shape == (B, V2)
        assert jnp.allclose(o, ref, atol=2e-3)
        assert jnp.allclose(jnp.sum(o, axis=-1), 1.0, atol=1e-4)

    print("KERNEL_OK")
</pallas_src>

<mosaic_0001>
module attributes {stable_mosaic.version = 11 : i64} {
  func.func @_decoder_kernel(%arg0: i32, %arg1: i32, %arg2: memref<8x32xf32, #tpu.memory_space<vmem>>, %arg3: memref<32x32xf32, #tpu.memory_space<vmem>>, %arg4: memref<1x32xf32, #tpu.memory_space<vmem>>, %arg5: memref<1x32x128xf32, #tpu.memory_space<vmem>>, %arg6: memref<1x1x128xf32, #tpu.memory_space<vmem>>, %arg7: memref<1x8x128xf32, #tpu.memory_space<vmem>>, %arg8: memref<8x32xf32, #tpu.memory_space<vmem>>) attributes {dimension_semantics = [#tpu.dimension_semantics<parallel>, #tpu.dimension_semantics<arbitrary>], iteration_bounds = array<i64: 3, 1>, scalar_prefetch = 0 : i64, scratch_operands = 1 : i64, tpu.core_type = #tpu.core_type<tc>, window_params = [{pipeline_mode = #tpu.pipeline_mode<synchronous>, transform_indices = @transform_0, window_bounds = array<i64: 8, 32>}, {pipeline_mode = #tpu.pipeline_mode<synchronous>, transform_indices = @transform_1, window_bounds = array<i64: 32, 32>}, {pipeline_mode = #tpu.pipeline_mode<synchronous>, transform_indices = @transform_2, window_bounds = array<i64: 1, 32>}, {transform_indices = @transform_3, window_bounds = array<i64: 1, 32, 128>}, {transform_indices = @transform_4, window_bounds = array<i64: 1, 1, 128>}, {transform_indices = @transform_5, window_bounds = array<i64: 1, 8, 128>}]} {
    %c0_i32 = arith.constant 0 : i32
    %0 = arith.cmpi eq, %arg1, %c0_i32 : i32
    %1 = arith.extui %0 : i1 to i32
    %c0_i32_0 = arith.constant 0 : i32
    %2 = arith.cmpi ne, %1, %c0_i32_0 : i32
    scf.if %2 {
      %c0_12 = arith.constant 0 : index
      %c0_13 = arith.constant 0 : index
      %20 = vector.load %arg2[%c0_12, %c0_13] : memref<8x32xf32, #tpu.memory_space<vmem>>, vector<8x32xf32>
      %c0_14 = arith.constant 0 : index
      %c0_15 = arith.constant 0 : index
      %21 = vector.load %arg3[%c0_14, %c0_15] : memref<32x32xf32, #tpu.memory_space<vmem>>, vector<32x32xf32>
      %cst_16 = arith.constant dense<0.000000e+00> : vector<8x32xf32>
      %22 = tpu.matmul %20, %21, %cst_16 {dimension_numbers = #tpu.dot_dimension_numbers<[1], [0], [0], [1], [0, 0, 1, 1], [], []>} : vector<8x32xf32>, vector<32x32xf32>, vector<8x32xf32> -> vector<8x32xf32>
      %c0_17 = arith.constant 0 : index
      %c0_18 = arith.constant 0 : index
      %23 = vector.load %arg4[%c0_17, %c0_18] : memref<1x32xf32, #tpu.memory_space<vmem>>, vector<1x32xf32>
      %24 = vector.broadcast %23 : vector<1x32xf32> to vector<8x32xf32>
      %25 = arith.addf %22, %24 : vector<8x32xf32>
      %26 = math.tanh %25 : vector<8x32xf32>
      %c0_19 = arith.constant 0 : index
      %c0_20 = arith.constant 0 : index
      %27 = vector.load %arg8[%c0_19, %c0_20] : memref<8x32xf32, #tpu.memory_space<vmem>>, vector<8x32xf32>
      tpu.vector_store %arg8[%c0_19, %c0_20], %26 {strides = array<i32>} : memref<8x32xf32, #tpu.memory_space<vmem>>, vector<8x32xf32>,
    } else {
    }
    %c0 = arith.constant 0 : index
    %c0_1 = arith.constant 0 : index
    %3 = vector.load %arg8[%c0, %c0_1] : memref<8x32xf32, #tpu.memory_space<vmem>>, vector<8x32xf32>
    %c0_2 = arith.constant 0 : index
    %c0_3 = arith.constant 0 : index
    %c0_4 = arith.constant 0 : index
    %4 = vector.load %arg5[%c0_2, %c0_3, %c0_4] : memref<1x32x128xf32, #tpu.memory_space<vmem>>, vector<1x32x128xf32>
    %5 = vector.shape_cast %4 : vector<1x32x128xf32> to vector<32x128xf32>
    %cst = arith.constant dense<0.000000e+00> : vector<8x128xf32>
    %6 = tpu.matmul %3, %5, %cst {dimension_numbers = #tpu.dot_dimension_numbers<[1], [0], [0], [1], [0, 0, 1, 1], [], []>} : vector<8x32xf32>, vector<32x128xf32>, vector<8x128xf32> -> vector<8x128xf32>
    %c0_5 = arith.constant 0 : index
    %c0_6 = arith.constant 0 : index
    %c0_7 = arith.constant 0 : index
    %7 = vector.load %arg6[%c0_5, %c0_6, %c0_7] : memref<1x1x128xf32, #tpu.memory_space<vmem>>, vector<1x1x128xf32>
    %8 = vector.shape_cast %7 : vector<1x1x128xf32> to vector<1x128xf32>
    %9 = vector.broadcast %8 : vector<1x128xf32> to vector<8x128xf32>
    %10 = arith.addf %6, %9 : vector<8x128xf32>
    %c128_i32 = arith.constant 128 : i32
    %11 = arith.muli %arg1, %c128_i32 : i32
    %12 = tpu.assume_multiple %11, 128 : i32
    %c0_8 = arith.constant 0 : index
    %c0_9 = arith.constant 0 : index
    %13 = arith.index_cast %12 : i32 to index
    %14 = vector.load %arg7[%c0_8, %c0_9, %13] : memref<1x8x128xf32, #tpu.memory_space<vmem>>, vector<1x8x128xf32>
    %15 = vector.shape_cast %14 : vector<1x8x128xf32> to vector<8x128xf32>
    %16 = vector.shape_cast %10 : vector<8x128xf32> to vector<1x8x128xf32>
    tpu.vector_store %arg7[%c0_8, %c0_9, %13], %16 {strides = array<i32>} : memref<1x8x128xf32, #tpu.memory_space<vmem>>, vector<1x8x128xf32>,
    %c0_i32_10 = arith.constant 0 : i32
    %17 = arith.cmpi eq, %arg1, %c0_i32_10 : i32
    %18 = arith.extui %17 : i1 to i32
    %c0_i32_11 = arith.constant 0 : i32
    %19 = arith.cmpi ne, %18, %c0_i32_11 : i32
    scf.if %19 {
      %c0_12 = arith.constant 0 : index
      %c0_13 = arith.constant 0 : index
      %c0_14 = arith.constant 0 : index
      %20 = vector.load %arg7[%c0_12, %c0_13, %c0_14] : memref<1x8x128xf32, #tpu.memory_space<vmem>>, vector<1x8x128xf32>
      %21 = vector.shape_cast %20 : vector<1x8x128xf32> to vector<8x128xf32>
      %cst_15 = arith.constant dense<0xFF800000> : vector<8xf32>
      %22 = vector.multi_reduction <maximumf>, %21, %cst_15 [1] : vector<8x128xf32> to vector<8xf32>
      %23 = vector.shape_cast %22 : vector<8xf32> to vector<8x1xf32>
      %24 = vector.broadcast %23 : vector<8x1xf32> to vector<8x128xf32>
      %25 = arith.subf %21, %24 : vector<8x128xf32>
      %26 = math.exp %25 : vector<8x128xf32>
      %cst_16 = arith.constant dense<0.000000e+00> : vector<8xf32>
      %27 = vector.multi_reduction <add>, %26, %cst_16 [1] : vector<8x128xf32> to vector<8xf32>
      %28 = vector.shape_cast %27 : vector<8xf32> to vector<8x1xf32>
      %29 = tpu.reciprocal %28 : vector<8x1xf32> -> vector<8x1xf32>
      %30 = vector.broadcast %29 : vector<8x1xf32> to vector<8x128xf32>
      %31 = arith.mulf %26, %30 : vector<8x128xf32>
      %c0_17 = arith.constant 0 : index
      %c0_18 = arith.constant 0 : index
      %c0_19 = arith.constant 0 : index
      %32 = vector.load %arg7[%c0_17, %c0_18, %c0_19] : memref<1x8x128xf32, #tpu.memory_space<vmem>>, vector<1x8x128xf32>
      %33 = vector.shape_cast %32 : vector<1x8x128xf32> to vector<8x128xf32>
      %34 = vector.shape_cast %31 : vector<8x128xf32> to vector<1x8x128xf32>
      tpu.vector_store %arg7[%c0_17, %c0_18, %c0_19], %34 {strides = array<i32>} : memref<1x8x128xf32, #tpu.memory_space<vmem>>, vector<1x8x128xf32>,
    } else {
    }
    return
  }
  func.func @transform_0(%arg0: i32, %arg1: i32) -> (i32, i32) {
    %c0_i32 = arith.constant 0 : i32
    %c0_i32_0 = arith.constant 0 : i32
    %c0_i32_1 = arith.constant 0 : i32
    return %c0_i32, %c0_i32_0 : i32, i32
  }
  func.func @transform_1(%arg0: i32, %arg1: i32) -> (i32, i32) {
    %c0_i32 = arith.constant 0 : i32
    %c0_i32_0 = arith.constant 0 : i32
    %c0_i32_1 = arith.constant 0 : i32
    return %c0_i32, %c0_i32_0 : i32, i32
  }
  func.func @transform_2(%arg0: i32, %arg1: i32) -> (i32, i32) {
    %c0_i32 = arith.constant 0 : i32
    %c0_i32_0 = arith.constant 0 : i32
    %c0_i32_1 = arith.constant 0 : i32
    return %c0_i32, %c0_i32_0 : i32, i32
  }
  func.func @transform_3(%arg0: i32, %arg1: i32) -> (i32, i32, i32) {
    %c0_i32 = arith.constant 0 : i32
    %c0_i32_0 = arith.constant 0 : i32
    return %arg0, %c0_i32, %arg1 : i32, i32, i32
  }
  func.func @transform_4(%arg0: i32, %arg1: i32) -> (i32, i32, i32) {
    %c0_i32 = arith.constant 0 : i32
    %c0_i32_0 = arith.constant 0 : i32
    return %arg0, %c0_i32, %arg1 : i32, i32, i32
  }
  func.func @transform_5(%arg0: i32, %arg1: i32) -> (i32, i32, i32) {
    %c0_i32 = arith.constant 0 : i32
    %c0_i32_0 = arith.constant 0 : i32
    %c0_i32_1 = arith.constant 0 : i32
    return %arg0, %c0_i32, %c0_i32_0 : i32, i32, i32
  }
}

</mosaic_0001>

<bundles_post_ra>
// kernel: decoder_forward.1
= control target key start
LH: loop header
LB: loop body
LE: loop exit
PB: predicated region body
PF: predicated region fallthrough
CT: control target
= control target key end

     0   :  { %s697_s18 = smov 0   ;;  %s699_s19 = smov 0   ;;  %s763_s0 = inlined_call_operand.vmem [shape: f32[8,32], index: 0, kind: input, shape index: {}]   ;;  %s764_s1 = inlined_call_operand.vmem [shape: f32[32,32], index: 1, kind: input, shape index: {}]   ;;  %s765_s2 = inlined_call_operand.vmem [shape: f32[1,32], index: 2, kind: input, shape index: {}]   ;;  %s766_s3 = inlined_call_operand.vmem [shape: f32[3,32,128], index: 3, kind: input, shape index: {}]   ;;  %s767_s4 = inlined_call_operand.vmem [shape: f32[3,1,128], index: 4, kind: input, shape index: {}]   ;;  %s768_s5 = inlined_call_operand.vmem [shape: f32[3,8,128], index: 5, kind: output, shape index: {}]  }
   0x1   :  { %s701_s20 = smov 0  }
   0x2 LB: > { %s27_s21 = sadd.s32 1, %s658_s19  ;;  %p552_p0 = scmp.ge.s32.totalorder %s662_s20, 1  ;;  %s662_s20 = sphi %s701_s20, %s15_s20   ;;  %s658_s19 = sphi %s699_s19, %s770_s19   ;;  %s654_s18 = sphi %s697_s18, %s769_s18  }
   0x3   : > { %p29_p1 = scmp.ge.s32.totalorder %s27_s21, 3  ;;  %p217_p2 = scmp.lt.s32.totalorder %s662_s20, 4 }
   0x5   : > { %s772_s21 = smov (%p29_p1, %s27_s21), 0  ;;  %p218_p3 = pnand %p552_p0, %p217_p2 }
   0x6   : > { %v276_v0 = vld [vmem:[%s764_s1] sm:$0xff] (!%p218_p3)  ;;  %v277_v1 = vld [vmem:[%s764_s1 + $0x8] sm:$0xff] (!%p218_p3)  ;;  %v278_v2 = vld [vmem:[%s764_s1 + $0x10] sm:$0xff] (!%p218_p3)  ;;  %v664_v3 = vmov (!%p218_p3), 0.0|0.0   ;;  %vm665_vm0 = vmmov (!%p218_p3), 0   ;;  %v666_v6 = vmov (!%p218_p3), 0.0  }
   0x7   : > { %221 = sbr.rel (%p218_p3) target bundleno = 776 (0x308), region = 40  ;;  %595 = vmatprep.subr.bf16.mxu0 (!%p218_p3), %v664_v3  ;;  %v596_v4 = vpack.c.bf16 (!%p218_p3), %v277_v1, %v276_v0  ;;  %v279_v5 = vld [vmem:[%s764_s1 + $0x18] sm:$0xff] (!%p218_p3)  ;;  %581 = vmatprep.mubr.msk.f32.mxu0 (!%p218_p3), %vm665_vm0, %v666_v6  ;;  %v275_v8 = vld [vmem:[%s763_s0] sm:$0xff] (!%p218_p3)  ;;  %vm287_vm1 = vcmask (!%p218_p3), 261120   ;;  %p253_p4 = scmp.lt.s32.totalorder (!%p218_p3), %s654_s18, 2 }
   0x8   : > { %601 = vmatprep.subr.bf16.mxu1 (!%p218_p3), %v664_v3  ;;  %592 = vmatprep.mubr.msk.f32.mxu1 (!%p218_p3), %vm665_vm0, %v666_v6  ;;  %v599_v7 = vpack.c.bf16 (!%p218_p3), %v279_v5, %v278_v2  ;;  %v556_v15 = vld [vmem:[%s765_s2] ss:$0 sm:$0xff] (!%p218_p3) }
   0x9   : > { %597 = vmatpush3.bf16.msra.mxu0 (!%p218_p3), %v596_v4 }
   0xa   : > { %598 = vmatprep.subr.bf16.mxu0 (!%p218_p3), %v664_v3 }
   0xd   : > { %600 = vmatpush3.bf16.msra.mxu0 (!%p218_p3), %v599_v7 }
   0xe   : > { %s774_s18 = smov (!%p253_p4, %s654_s18), 2 }
   0xf   : > { %s562_s7 = sshll.u32 %s774_s18, 5  ;;  %s266_s15 = scalar_lea.vmem %s767_s4, %s774_s18 }
  0x10   : > { %582 = vmatmul.mubr.msk.f32.vlgmr.msra.gmra.mrb[0].mxu0 %vm287_vm1, %v275_v8  ;;  %s260_s10 = scalar_lea.vmem %s766_s3, %s562_s7  ;;  %v558_v21 = vld [vmem:[%s266_s15] ss:$0 sm:$0xff]  ;;  %s555_s16 = sshll.u32 %s774_s18, 3 }
  0x11   : > { %v364_v9 = vld [vmem:[%s260_s10] sm:$0xff]  ;;  %v365_v10 = vld [vmem:[%s260_s10 + $0x8] sm:$0xff]  ;;  %v366_v12 = vld [vmem:[%s260_s10 + $0x10] sm:$0xff]  ;;  %s270_s23 = scalar_lea.vmem %s768_s5, %s555_s16 }
  0x12   : > { %v602_v11 = vpack.c.bf16 %v365_v10, %v364_v9  ;;  %v367_v13 = vld [vmem:[%s260_s10 + $0x18] sm:$0xff] }
  0x13   : > { %v605_v14 = vpack.c.bf16 %v367_v13, %v366_v12 }
  0x14   : > { %603 = vmatpush3.bf16.msra.mxu1 %v602_v11 }
  0x15   : > { %604 = vmatprep.subr.bf16.mxu1 %v664_v3 }
  0x18   : > { %606 = vmatpush3.bf16.msra.mxu1 %v605_v14 }
  0xe3   : > { %v357_v16 = vpop.f32.mrb[0].mxu0 }
  0xe4   : > { %v358_v17 = vadd.f32 %v556_v15, %v357_v16  ;;  %v583_v18 = vpop.f32.mrb[1].mxu0 }
  0xe6   : > { %634 = vtanh.f32 %v358_v17 }
  0xf0   : > { %v635_v19 = vpop.eup %634 }
  0xf1   : > { %362 = vst.msk [vmem:[#allocation2] sm:$0xff] %vm287_vm1, %v635_v19 }
  0xf8   : > { %v363_v20 = vld [vmem:[#allocation2] sm:$0xff] }
  0xf9   : > { %593 = vmatmul.mubr.msk.f32.vlgmr.msra.gmra.mrb[0].mxu1 %vm287_vm1, %v363_v20 }
 0x1cc   : > { %v445_v22 = vpop.f32.mrb[0].mxu1 }
 0x1cd   : > { %v446_v23 = vadd.f32 %v558_v21, %v445_v22  ;;  %v594_v24 = vpop.f32.mrb[1].mxu1 }
 0x1cf   : > { %458 = vmax.xlane.f32.xlu0 %v446_v23 }
 0x25c   : > { %v459_v25 = vpop.xlane.xlu0 %458 }
 0x25d   : > { %v460_v26 = vsub.f32 %v446_v23, %v459_v25 }
 0x25f   : > { %v461_v27 = vmul.f32 1.442695, %v460_v26 }
 0x261   : > { %636 = vpow2.f32 %v461_v27 }
 0x26b   : > { %v637_v28 = vpop.eup %636 }
 0x26c   : > { %463 = vadd.xlane.f32.xlu0 %v637_v28 }
 0x2f9   : > { %v464_v29 = vpop.xlane.xlu0 %463 }
 0x2fa   : > { %638 = vrcp.f32 %v464_v29 }
 0x304   : > { %v639_v30 = vpop.eup %638 }
 0x305   : > { %v466_v31 = vmul.f32 %v639_v30, %v637_v28 }
 0x307   : > { %467 = vst [vmem:[%s270_s23] sm:$0xff] %v466_v31 }
 0x308 PF: > { %s15_s20 = sadd.s32 1, %s662_s20   ;;  %s769_s18 = smov %s658_s19 }
 0x309   : > { %p12_p5 = scmp.ge.s32.totalorder %s15_s20, 5   ;;  %s770_s19 = smov %s772_s21 }
 0x30b   :  { %14 = sbr.rel (!%p12_p5) target bundleno = 2 (0x2), region = 82 }

</bundles_post_ra>
